<compile_context>
chip_gen: v7x
topology: tpu7x:2x2x1
jax: 0.10.0
libtpu: 0.0.40
codegen_flags: <defaults>
</compile_context>

<pallas_src>
import functools

import jax
import jax.numpy as jnp
from jax.experimental import pallas as pl
from jax.experimental.pallas import tpu as pltpu

EPS = 1e-5


def _decoder_kernel(has_in_proj, has_out_proj, *refs):
    """One grid step == one ReZero layer; projections on first/last step."""
    it = iter(refs)
    x_ref = next(it)                       # (N, Din)
    if has_in_proj:
        win_ref = next(it)                 # (Din, H)   pre-transposed
        bin_ref = next(it)                 # (1, H)
    w_ref = next(it)                       # (H, H)     pre-transposed: y = h @ w
    gb_ref = next(it)                      # (2, H)     [gamma; beta]
    if has_out_proj:
        wout_ref = next(it)                # (H, Dout)  pre-transposed
        bout_ref = next(it)                # (1, Dout)
    alpha_ref = next(it)                   # (L,) in SMEM
    o_ref = next(it)                       # (N, Dout)
    carry = next(it)                       # (N, H) f32 VMEM scratch (residual)

    l = pl.program_id(0)
    last = pl.num_programs(0) - 1

    # ---- first layer: load input (and apply the input projection) ----
    @pl.when(l == 0)
    def _():
        x = x_ref[...].astype(jnp.float32)
        if has_in_proj:
            carry[...] = (
                jnp.dot(x, win_ref[...], preferred_element_type=jnp.float32)
                + bin_ref[...]
            )
        else:
            carry[...] = x

    h = carry[...]                                          # (N, H) f32

    # ---- ReZero layer l ----
    # Linear (bias omitted: it cancels exactly under batch-stat BatchNorm).
    y = jnp.dot(h, w_ref[...], preferred_element_type=jnp.float32)

    # BatchNorm1d, training-mode batch statistics (biased variance).
    mean = jnp.mean(y, axis=0, keepdims=True)               # (1, H)
    cent = y - mean
    var = jnp.mean(cent * cent, axis=0, keepdims=True)      # (1, H)
    gb = gb_ref[...]                                        # (2, H)
    gamma = gb[0:1, :]
    beta = gb[1:2, :]
    bn = gamma * cent * jax.lax.rsqrt(var + EPS) + beta

    # ReLU, ReZero residual.
    alpha = alpha_ref[l]                                    # scalar from SMEM
    h_new = jnp.maximum(bn, 0.0) * alpha + h
    carry[...] = h_new

    # ---- last layer: output projection + the only output store ----
    @pl.when(l == last)
    def _():
        if has_out_proj:
            out = (
                jnp.dot(h_new, wout_ref[...], preferred_element_type=jnp.float32)
                + bout_ref[...]
            )
        else:
            out = h_new
        o_ref[...] = out.astype(o_ref.dtype)


def decoder_forward(x, params):
    """Pallas Decoder forward.

    params (PyTorch conventions, transposed here once on the wrapper side):
      w_in : (H, Din) or None    b_in : (H,)   or None
      w_res: (L, H, H)           gamma, beta: (L, H)      alpha: (L,)
      w_out: (Dout, H) or None   b_out: (Dout,) or None
    (b_res is intentionally NOT consumed by the kernel: it cancels under BN.)
    """
    N, Din = x.shape
    w_res = params["w_res"]
    L, H, _ = w_res.shape
    has_in = params.get("w_in") is not None
    has_out = params.get("w_out") is not None
    Dout = params["w_out"].shape[0] if has_out else H

    # Pre-transpose weights so the MXU contracts the last dim (no in-kernel .T).
    w_res_t = jnp.transpose(w_res, (0, 2, 1))                         # (L, H, H)
    gb = jnp.stack([params["gamma"], params["beta"]], axis=1)         # (L, 2, H)

    inputs = [x]
    in_specs = [pl.BlockSpec((N, Din), lambda l: (0, 0))]             # resident
    if has_in:
        inputs += [params["w_in"].T, params["b_in"].reshape(1, H)]
        in_specs += [
            pl.BlockSpec((Din, H), lambda l: (0, 0)),
            pl.BlockSpec((1, H), lambda l: (0, 0)),
        ]
    inputs += [w_res_t, gb]
    in_specs += [
        pl.BlockSpec((pl.Squeezed(), H, H), lambda l: (l, 0, 0)),     # per-layer W
        pl.BlockSpec((pl.Squeezed(), 2, H), lambda l: (l, 0, 0)),     # gamma/beta
    ]
    if has_out:
        inputs += [params["w_out"].T, params["b_out"].reshape(1, Dout)]
        in_specs += [
            pl.BlockSpec((H, Dout), lambda l: (0, 0)),
            pl.BlockSpec((1, Dout), lambda l: (0, 0)),
        ]
    inputs += [params["alpha"]]
    in_specs += [pl.BlockSpec(memory_space=pltpu.MemorySpace.SMEM)]   # alphas

    kernel = functools.partial(_decoder_kernel, has_in, has_out)

    return pl.pallas_call(
        kernel,
        out_shape=jax.ShapeDtypeStruct((N, Dout), x.dtype),
        grid_spec=pltpu.PrefetchScalarGridSpec(
            num_scalar_prefetch=0,
            grid=(L,),
            in_specs=in_specs,
            out_specs=pl.BlockSpec((N, Dout), lambda l: (0, 0)),
            scratch_shapes=[pltpu.VMEM((N, H), jnp.float32)],
        ),
        compiler_params=pltpu.CompilerParams(
            # The layer axis is an inherently sequential carried loop.
            dimension_semantics=("arbitrary",),
            # For large H, set vmem_limit_bytes here (double-buffered W is
            # 2*H*H*bytes; scoped defaults are 16/32/32 MiB on v5e/v6e/v7x).
        ),
    )(*inputs)


def decoder_ref(x, params):
    """Pure-JAX reference mirroring the torch forward (keeps the ReZero bias)."""
    h = x.astype(jnp.float32)
    if params.get("w_in") is not None:
        h = h @ params["w_in"].T + params["b_in"]
    L = params["w_res"].shape[0]
    for l in range(L):
        y = h @ params["w_res"][l].T + params["b_res"][l]
        m = jnp.mean(y, axis=0, keepdims=True)
        v = jnp.mean((y - m) ** 2, axis=0, keepdims=True)
        bn = params["gamma"][l] * (y - m) / jnp.sqrt(v + EPS) + params["beta"][l]
        h = jnp.maximum(bn, 0.0) * params["alpha"][l] + h
    if params.get("w_out") is not None:
        h = h @ params["w_out"].T + params["b_out"]
    return h.astype(x.dtype)


if __name__ == "__main__":
    # batch=8, input_dim=16, hidden_dim=32, output_dim=24, n_layers=3
    N, Din, H, Dout, L = 8, 16, 32, 24, 3

    key = jax.random.PRNGKey(0)
    keys = jax.random.split(key, 8)

    x = jax.random.normal(keys[0], (N, Din), dtype=jnp.float32)

    def uinit(k, shape, fan_in):
        bound = 1.0 / jnp.sqrt(fan_in)
        return jax.random.uniform(k, shape, jnp.float32, -bound, bound)

    params = dict(
        w_in=uinit(keys[1], (H, Din), Din),
        b_in=uinit(keys[2], (H,), Din),
        w_res=uinit(keys[3], (L, H, H), H),
        b_res=uinit(keys[4], (L, H), H),   # used by the reference only: cancels under BN
        # BatchNorm1d defaults are gamma=1, beta=0; perturb slightly so the
        # scale/shift path is actually exercised.
        gamma=1.0 + 0.1 * jax.random.normal(keys[5], (L, H), jnp.float32),
        beta=0.1 * jax.random.normal(keys[6], (L, H), jnp.float32),
        # torch init is alpha = 0.0 (identity ReZero); use nonzero values so
        # the Linear/BN/ReLU path contributes.  Graph is identical.
        alpha=0.1 * (jnp.arange(L, dtype=jnp.float32) + 1.0),
        w_out=uinit(keys[7], (Dout, H), H),
        b_out=uinit(keys[2], (Dout,), H),
    )

    out = decoder_forward(x, params)
    jax.block_until_ready(out)

    ref = decoder_ref(x, params)
    assert out.shape == (N, Dout) and out.dtype == x.dtype
    assert jnp.allclose(out, ref, atol=1e-4, rtol=1e-4), "mismatch vs reference"

    print("KERNEL_OK")
</pallas_src>

<mosaic_0001>
module attributes {stable_mosaic.version = 11 : i64} {
  func.func @_decoder_kernel(%arg0: i32, %arg1: memref<8x16xf32, #tpu.memory_space<vmem>>, %arg2: memref<16x32xf32, #tpu.memory_space<vmem>>, %arg3: memref<1x32xf32, #tpu.memory_space<vmem>>, %arg4: memref<1x32x32xf32, #tpu.memory_space<vmem>>, %arg5: memref<1x2x32xf32, #tpu.memory_space<vmem>>, %arg6: memref<32x24xf32, #tpu.memory_space<vmem>>, %arg7: memref<1x24xf32, #tpu.memory_space<vmem>>, %arg8: memref<3xf32, #tpu.memory_space<smem>>, %arg9: memref<8x24xf32, #tpu.memory_space<vmem>>, %arg10: memref<8x32xf32, #tpu.memory_space<vmem>>) attributes {dimension_semantics = [#tpu.dimension_semantics<arbitrary>], iteration_bounds = array<i64: 3>, scalar_prefetch = 0 : i64, scratch_operands = 1 : i64, tpu.core_type = #tpu.core_type<tc>, window_params = [{pipeline_mode = #tpu.pipeline_mode<synchronous>, transform_indices = @transform_0, window_bounds = array<i64: 8, 16>}, {pipeline_mode = #tpu.pipeline_mode<synchronous>, transform_indices = @transform_1, window_bounds = array<i64: 16, 32>}, {pipeline_mode = #tpu.pipeline_mode<synchronous>, transform_indices = @transform_2, window_bounds = array<i64: 1, 32>}, {transform_indices = @transform_3, window_bounds = array<i64: 1, 32, 32>}, {transform_indices = @transform_4, window_bounds = array<i64: 1, 2, 32>}, {pipeline_mode = #tpu.pipeline_mode<synchronous>, transform_indices = @transform_5, window_bounds = array<i64: 32, 24>}, {pipeline_mode = #tpu.pipeline_mode<synchronous>, transform_indices = @transform_6, window_bounds = array<i64: 1, 24>}, {transform_indices = @transform_7, window_bounds = array<i64: 3>}, {pipeline_mode = #tpu.pipeline_mode<synchronous>, transform_indices = @transform_8, window_bounds = array<i64: 8, 24>}]} {
    %c0_i32 = arith.constant 0 : i32
    %0 = arith.cmpi eq, %arg0, %c0_i32 : i32
    %1 = arith.extui %0 : i1 to i32
    %c0_i32_0 = arith.constant 0 : i32
    %2 = arith.cmpi ne, %1, %c0_i32_0 : i32
    scf.if %2 {
      %c0_17 = arith.constant 0 : index
      %c0_18 = arith.constant 0 : index
      %42 = vector.load %arg1[%c0_17, %c0_18] : memref<8x16xf32, #tpu.memory_space<vmem>>, vector<8x16xf32>
      %c0_19 = arith.constant 0 : index
      %c0_20 = arith.constant 0 : index
      %43 = vector.load %arg2[%c0_19, %c0_20] : memref<16x32xf32, #tpu.memory_space<vmem>>, vector<16x32xf32>
      %cst_21 = arith.constant dense<0.000000e+00> : vector<8x32xf32>
      %44 = tpu.matmul %42, %43, %cst_21 {dimension_numbers = #tpu.dot_dimension_numbers<[1], [0], [0], [1], [0, 0, 1, 1], [], []>} : vector<8x16xf32>, vector<16x32xf32>, vector<8x32xf32> -> vector<8x32xf32>
      %c0_22 = arith.constant 0 : index
      %c0_23 = arith.constant 0 : index
      %45 = vector.load %arg3[%c0_22, %c0_23] : memref<1x32xf32, #tpu.memory_space<vmem>>, vector<1x32xf32>
      %46 = vector.broadcast %45 : vector<1x32xf32> to vector<8x32xf32>
      %47 = arith.addf %44, %46 : vector<8x32xf32>
      %c0_24 = arith.constant 0 : index
      %c0_25 = arith.constant 0 : index
      %48 = vector.load %arg10[%c0_24, %c0_25] : memref<8x32xf32, #tpu.memory_space<vmem>>, vector<8x32xf32>
      tpu.vector_store %arg10[%c0_24, %c0_25], %47 {strides = array<i32>} : memref<8x32xf32, #tpu.memory_space<vmem>>, vector<8x32xf32>,
    } else {
    }
    %c0 = arith.constant 0 : index
    %c0_1 = arith.constant 0 : index
    %3 = vector.load %arg10[%c0, %c0_1] : memref<8x32xf32, #tpu.memory_space<vmem>>, vector<8x32xf32>
    %c0_2 = arith.constant 0 : index
    %c0_3 = arith.constant 0 : index
    %c0_4 = arith.constant 0 : index
    %4 = vector.load %arg4[%c0_2, %c0_3, %c0_4] : memref<1x32x32xf32, #tpu.memory_space<vmem>>, vector<1x32x32xf32>
    %5 = vector.shape_cast %4 : vector<1x32x32xf32> to vector<32x32xf32>
    %cst = arith.constant dense<0.000000e+00> : vector<8x32xf32>
    %6 = tpu.matmul %3, %5, %cst {dimension_numbers = #tpu.dot_dimension_numbers<[1], [0], [0], [1], [0, 0, 1, 1], [], []>} : vector<8x32xf32>, vector<32x32xf32>, vector<8x32xf32> -> vector<8x32xf32>
    %cst_5 = arith.constant dense<0.000000e+00> : vector<32xf32>
    %7 = vector.multi_reduction <add>, %6, %cst_5 [0] : vector<8x32xf32> to vector<32xf32>
    %8 = vector.shape_cast %7 : vector<32xf32> to vector<1x32xf32>
    %cst_6 = arith.constant 8.000000e+00 : f32
    %9 = vector.broadcast %cst_6 : f32 to vector<1x32xf32>
    %10 = arith.divf %8, %9 : vector<1x32xf32>
    %11 = vector.broadcast %10 : vector<1x32xf32> to vector<8x32xf32>
    %12 = arith.subf %6, %11 : vector<8x32xf32>
    %13 = arith.mulf %12, %12 : vector<8x32xf32>
    %cst_7 = arith.constant dense<0.000000e+00> : vector<32xf32>
    %14 = vector.multi_reduction <add>, %13, %cst_7 [0] : vector<8x32xf32> to vector<32xf32>
    %15 = vector.shape_cast %14 : vector<32xf32> to vector<1x32xf32>
    %cst_8 = arith.constant 8.000000e+00 : f32
    %16 = vector.broadcast %cst_8 : f32 to vector<1x32xf32>
    %17 = arith.divf %15, %16 : vector<1x32xf32>
    %c0_9 = arith.constant 0 : index
    %c0_10 = arith.constant 0 : index
    %c0_11 = arith.constant 0 : index
    %18 = vector.load %arg5[%c0_9, %c0_10, %c0_11] : memref<1x2x32xf32, #tpu.memory_space<vmem>>, vector<1x2x32xf32>
    %19 = vector.shape_cast %18 : vector<1x2x32xf32> to vector<2x32xf32>
    %20 = vector.extract_strided_slice %19 {offsets = [0, 0], sizes = [1, 32], strides = [1, 1]} : vector<2x32xf32> to vector<1x32xf32>
    %21 = vector.extract_strided_slice %19 {offsets = [1, 0], sizes = [1, 32], strides = [1, 1]} : vector<2x32xf32> to vector<1x32xf32>
    %22 = vector.broadcast %20 : vector<1x32xf32> to vector<8x32xf32>
    %23 = arith.mulf %22, %12 : vector<8x32xf32>
    %cst_12 = arith.constant 9.99999974E-6 : f32
    %24 = vector.broadcast %cst_12 : f32 to vector<1x32xf32>
    %25 = arith.addf %17, %24 : vector<1x32xf32>
    %26 = math.rsqrt %25 : vector<1x32xf32>
    %27 = vector.broadcast %26 : vector<1x32xf32> to vector<8x32xf32>
    %28 = arith.mulf %23, %27 : vector<8x32xf32>
    %29 = vector.broadcast %21 : vector<1x32xf32> to vector<8x32xf32>
    %30 = arith.addf %28, %29 : vector<8x32xf32>
    %31 = arith.index_cast %arg0 : i32 to index
    %32 = memref.load %arg8[%31] : memref<3xf32, #tpu.memory_space<smem>>
    %cst_13 = arith.constant 0.000000e+00 : f32
    %33 = vector.broadcast %cst_13 : f32 to vector<8x32xf32>
    %34 = arith.maximumf %30, %33 : vector<8x32xf32>
    %35 = vector.broadcast %32 : f32 to vector<8x32xf32>
    %36 = arith.mulf %34, %35 : vector<8x32xf32>
    %37 = arith.addf %36, %3 : vector<8x32xf32>
    %c0_14 = arith.constant 0 : index
    %c0_15 = arith.constant 0 : index
    %38 = vector.load %arg10[%c0_14, %c0_15] : memref<8x32xf32, #tpu.memory_space<vmem>>, vector<8x32xf32>
    tpu.vector_store %arg10[%c0_14, %c0_15], %37 {strides = array<i32>} : memref<8x32xf32, #tpu.memory_space<vmem>>, vector<8x32xf32>,
    %c2_i32 = arith.constant 2 : i32
    %39 = arith.cmpi eq, %arg0, %c2_i32 : i32
    %40 = arith.extui %39 : i1 to i32
    %c0_i32_16 = arith.constant 0 : i32
    %41 = arith.cmpi ne, %40, %c0_i32_16 : i32
    scf.if %41 {
      %c0_17 = arith.constant 0 : index
      %c0_18 = arith.constant 0 : index
      %42 = vector.load %arg6[%c0_17, %c0_18] : memref<32x24xf32, #tpu.memory_space<vmem>>, vector<32x24xf32>
      %cst_19 = arith.constant dense<0.000000e+00> : vector<8x24xf32>
      %43 = tpu.matmul %37, %42, %cst_19 {dimension_numbers = #tpu.dot_dimension_numbers<[1], [0], [0], [1], [0, 0, 1, 1], [], []>} : vector<8x32xf32>, vector<32x24xf32>, vector<8x24xf32> -> vector<8x24xf32>
      %c0_20 = arith.constant 0 : index
      %c0_21 = arith.constant 0 : index
      %44 = vector.load %arg7[%c0_20, %c0_21] : memref<1x24xf32, #tpu.memory_space<vmem>>, vector<1x24xf32>
      %45 = vector.broadcast %44 : vector<1x24xf32> to vector<8x24xf32>
      %46 = arith.addf %43, %45 : vector<8x24xf32>
      %c0_22 = arith.constant 0 : index
      %c0_23 = arith.constant 0 : index
      %47 = vector.load %arg9[%c0_22, %c0_23] : memref<8x24xf32, #tpu.memory_space<vmem>>, vector<8x24xf32>
      tpu.vector_store %arg9[%c0_22, %c0_23], %46 {strides = array<i32>} : memref<8x24xf32, #tpu.memory_space<vmem>>, vector<8x24xf32>,
    } else {
    }
    return
  }
  func.func @transform_0(%arg0: i32) -> (i32, i32) {
    %c0_i32 = arith.constant 0 : i32
    %c0_i32_0 = arith.constant 0 : i32
    %c0_i32_1 = arith.constant 0 : i32
    return %c0_i32, %c0_i32_0 : i32, i32
  }
  func.func @transform_1(%arg0: i32) -> (i32, i32) {
    %c0_i32 = arith.constant 0 : i32
    %c0_i32_0 = arith.constant 0 : i32
    %c0_i32_1 = arith.constant 0 : i32
    return %c0_i32, %c0_i32_0 : i32, i32
  }
  func.func @transform_2(%arg0: i32) -> (i32, i32) {
    %c0_i32 = arith.constant 0 : i32
    %c0_i32_0 = arith.constant 0 : i32
    %c0_i32_1 = arith.constant 0 : i32
    return %c0_i32, %c0_i32_0 : i32, i32
  }
  func.func @transform_3(%arg0: i32) -> (i32, i32, i32) {
    %c0_i32 = arith.constant 0 : i32
    %c0_i32_0 = arith.constant 0 : i32
    %c0_i32_1 = arith.constant 0 : i32
    return %arg0, %c0_i32, %c0_i32_0 : i32, i32, i32
  }
  func.func @transform_4(%arg0: i32) -> (i32, i32, i32) {
    %c0_i32 = arith.constant 0 : i32
    %c0_i32_0 = arith.constant 0 : i32
    %c0_i32_1 = arith.constant 0 : i32
    return %arg0, %c0_i32, %c0_i32_0 : i32, i32, i32
  }
  func.func @transform_5(%arg0: i32) -> (i32, i32) {
    %c0_i32 = arith.constant 0 : i32
    %c0_i32_0 = arith.constant 0 : i32
    %c0_i32_1 = arith.constant 0 : i32
    return %c0_i32, %c0_i32_0 : i32, i32
  }
  func.func @transform_6(%arg0: i32) -> (i32, i32) {
    %c0_i32 = arith.constant 0 : i32
    %c0_i32_0 = arith.constant 0 : i32
    %c0_i32_1 = arith.constant 0 : i32
    return %c0_i32, %c0_i32_0 : i32, i32
  }
  func.func @transform_7(%arg0: i32) -> i32 {
    %c0_i32 = arith.constant 0 : i32
    %c0_i32_0 = arith.constant 0 : i32
    return %c0_i32 : i32
  }
  func.func @transform_8(%arg0: i32) -> (i32, i32) {
    %c0_i32 = arith.constant 0 : i32
    %c0_i32_0 = arith.constant 0 : i32
    %c0_i32_1 = arith.constant 0 : i32
    return %c0_i32, %c0_i32_0 : i32, i32
  }
}

</mosaic_0001>

<bundles_post_ra>
// kernel: tpu_custom_call.1
= control target key start
LH: loop header
LB: loop body
LE: loop exit
PB: predicated region body
PF: predicated region fallthrough
CT: control target
= control target key end

     0   :  { %13 = vsyncpa [#allocation4], 0  ;;  %s1254_s0 = inlined_call_operand.vmem [shape: f32[8,16], index: 0, kind: input, shape index: {}]   ;;  %s1255_s1 = inlined_call_operand.vmem [shape: f32[16,32], index: 1, kind: input, shape index: {}]   ;;  %s1256_s2 = inlined_call_operand.vmem [shape: f32[1,32], index: 2, kind: input, shape index: {}]   ;;  %s1257_s3 = inlined_call_operand.hbm [shape: f32[3,32,32], index: 3, kind: input, shape index: {}]   ;;  %s1258_s4 = inlined_call_operand.vmem [shape: f32[3,2,32], index: 4, kind: input, shape index: {}]   ;;  %s1259_s5 = inlined_call_operand.vmem [shape: f32[32,24], index: 5, kind: input, shape index: {}]   ;;  %s1260_s6 = inlined_call_operand.vmem [shape: f32[1,24], index: 6, kind: input, shape index: {}]   ;;  %s1261_s7 = inlined_call_operand.vmem [shape: f32[3], index: 7, kind: input, shape index: {}]   ;;  %s1262_s8 = inlined_call_operand.hbm [shape: f32[8,24], index: 8, kind: output, shape index: {}]  }
   0x1   :  { %15 = vsyncpa [#allocation4 + $0x1], 0 }
   0x2   :  { %16 = vsyncpa [#allocation6], 0 }
   0x3   :  { %17 = vsyncpa [#allocation5], 0  ;;  %s1046_s27 = smov 0   ;;  %s1048_s28 = smov 0  }
   0x4   :  { %s1050_s29 = smov 0   ;;  %s1052_s30 = smov 0  }
   0x5 LB: > { %s1065_s9 = sadd.s32 4294967295, %s985_s30   ;;  %s1068_s10 = sadd.s32 1, %s985_s30   ;;  %s985_s30 = sphi %s1052_s30, %s1277_s30   ;;  %s981_s29 = sphi %s1050_s29, %s1276_s29   ;;  %s977_s28 = sphi %s1048_s28, %s1275_s28   ;;  %s973_s27 = sphi %s1046_s27, %s1274_s27  }
   0x6   : > { %s90_s11 = ssub.s32 %s985_s30, %s1068_s10  ;;  %s93_s12 = sadd.s32 1, %s981_s29 }
   0x7   : > { %p91_p0 = scmp.eq.s32.totalorder %s90_s11, 0  ;;  %p100_p1 = scmp.ne.s32.totalorder %s981_s29, %s977_s28 }
   0x8   : > { %p101_p2 = scmp.eq.s32.totalorder %s985_s30, 0  ;;  %p106_p3 = scmp.ne.s32.totalorder %s977_s28, %s973_s27 }
   0x9   : > { %s1078_s13 = scalar_select %p91_p0, %s981_s29, %s93_s12  }
   0xa   : > { %p1080_p4 = por %p101_p2, %p100_p1  ;;  %p1264_p5 = scmp.eq.s32.totalorder %s1065_s9, 0 }
   0xb   : > { %p723_p6 = scmp.ge.s32.totalorder %s985_s30, 1  ;;  %p227_p7 = scmp.lt.s32.totalorder %s985_s30, 4 }
   0xc   : > { %p1089_p8 = por %p1264_p5, %p106_p3  ;;  %s255_s19 = sshll.u32 %s1261_s7, 4  ;;  %s256_s19 = int_to_ptr.vmem [resolvable:$true] %s255_s19 }
   0xd   : > { %p1094_p10 = pnand %p723_p6, %p227_p7  ;;  %p821_p12 = scmp.lt.s32.totalorder %s985_s30, 3 }
   0xe   : > { %s1266_s15 = scalar_select %p1089_p8, 1, 0 }
   0xf   : > { %p812_p11 = pneg %p1094_p10  ;;  %s266_s20 = sand.u32 1, %s981_s29  }
  0x10   : > { %p1113_p0 = pnand %p821_p12, %p1080_p4  ;;  %s726_s23 = sshll.u32 %s266_s20, 5 }
  0x11   : > { %p1107_p13 = pnand %p812_p11, %p1264_p5  ;;  %s872_s24 = scalar_lea.vmem %s256_s19, 16 }
  0x12   : > { %p873_p1 = scmp.ne.s32.totalorder %s256_s19, %s872_s24  ;;  %p880_p7 = scmp.lt.s32.totalorder %s256_s19, %s256_s19 }
  0x13   : > { %p874_p2 = pneg %p1107_p13  ;;  %p881_p9 = scmp.lt.s32.totalorder %s872_s24, %s872_s24 }
  0x15   : > { %p875_p3 = pnand %p874_p2, %p873_p1  ;;  %p882_p8 = por %p881_p9, %p880_p7 }
  0x17   : > { %p876_p6 = pneg %p875_p3 }
  0x19   : > { %p883_p11 = pnand %p882_p8, %p876_p6 }
  0x1b   : > { %886 = shalt.err (!%p883_p11)
}
  0x1c   : > { %s987_s25 = smov [#allocation7]   ;;  %s744_s26 = sshll.u32 %s985_s30, 9 }
  0x1d   : > { %815 = dma.vmem_to_smem (!%p1107_p13), %s256_s19, 16, %s987_s25, [#allocation6]  }
  0x1e   : > { %s1125_s12 = scalar_lea.hbm %s1257_s3, %s744_s26  ;;  %s270_s14 = scalar_lea.vmem [#allocation3], %s726_s23 }
  0x1f   : > { %s277_s17 = sshll.u32 %s270_s14, 4  ;;  %s1129_s18 = scalar_lea.sflag [#allocation4], %s266_s20  ;;  %s1127_s17 = int_to_ptr.vmem [resolvable:$true] %s277_s17 }
  0x20   : > { %s887_s21 = scalar_lea.hbm %s1125_s12, 512  ;;  %p889_p8 = pneg %p1113_p0 }
  0x21   : > { %p888_p4 = scmp.ne.s32.totalorder %s1125_s12, %s887_s21  ;;  %s892_s24 = scalar_lea.hbm %s1257_s3, 1536 }
  0x22   : > { %p893_p13 = scmp.lt.u32.totalorder %s1125_s12, %s1257_s3  ;;  %p894_p1 = scmp.lt.u32.totalorder %s892_s24, %s887_s21 }
  0x23   : > { %p890_p9 = pnand %p889_p8, %p888_p4  ;;  %p896_p3 = scmp.lt.u32.totalorder %s887_s21, %s1125_s12 }
  0x24   : > { %p895_p2 = por %p894_p1, %p893_p13 }
  0x25   : > { %p891_p12 = pneg %p890_p9 }
  0x26   : > { %p897_p6 = por %p896_p3, %p895_p2 }
  0x28   : > { %p898_p7 = pnand %p897_p6, %p891_p12 }
  0x2a   : > { %901 = shalt.err (!%p898_p7)
}
  0x2b   : > { %s902_s20 = scalar_lea.vmem %s1127_s17, 512  ;;  %s988_s23 = smov [#allocation3]  }
  0x2c   : > { %p903_p11 = scmp.ne.s32.totalorder %s1127_s17, %s902_s20  ;;  %s907_s27 = sshll.u32 %s988_s23, 4  ;;  %s908_s27 = int_to_ptr.vmem [resolvable:$false] %s907_s27 }
  0x2d   : > { %s909_s11 = scalar_lea.vmem %s908_s27, 1024  ;;  %p910_p5 = scmp.lt.s32.totalorder %s1127_s17, %s908_s27 }
  0x2e   : > { %p905_p4 = pnand %p903_p11, %p889_p8  ;;  %p911_p13 = scmp.lt.s32.totalorder %s909_s11, %s902_s20 }
  0x30   : > { %p906_p9 = pneg %p905_p4  ;;  %p912_p1 = por %p911_p13, %p910_p5 }
  0x32   : > { %p913_p2 = pnand %p912_p1, %p906_p9 }
  0x34   : > { %916 = shalt.err (!%p913_p2)
}
  0x35   : > { %s989_s14 = smov 128   ;;  %s990_s21 = smov 8  }
  0x36   : > { %819 = dma.hbm_to_vmem [thread:$0]  (!%p1113_p0), %s1125_s12, 512, %s1127_s17, %s1129_s18, %s989_s14, %s989_s14, %s990_s21  }
  0x37   : > { %296 = sbr.rel (%p1094_p10) target bundleno = 811 (0x32b), region = 52  ;;  %s298_s30 = sand.u32 (!%p1094_p10), 1, %s977_s28  }
  0x38   : > { %s730_s19 = sshll.u32 (!%p1094_p10), %s298_s30, 5  ;;  %s299_s24 = scalar_lea.sflag (!%p1094_p10), [#allocation4], %s298_s30 }
  0x39   : > { %s1160_s25 = scalar_lea.vmem (!%p1094_p10), [#allocation3], %s730_s19  ;;  %p1270_p5 = scmp.ne.s32.totalorder (!%p1094_p10), %s1266_s15, 0 }
  0x3e   : > { %960 = dma.done.wait (%p1270_p5), %s299_s24, 512  }
  0x3f   : > { %962 = vsyncadd (%p1270_p5), %s299_s24, 4294966784  ;;  %p1271_p8 = scmp.eq.s32.totalorder %s1065_s9, 0 }
  0x41   : > { %964 = dma.done.wait (%p1271_p8), [#allocation6], 16   ;;  %p1272_p0 = pmov %p1271_p8 }
  0x43   : > { %966 = vsyncadd (%p1272_p0), [#allocation6], 4294967280 }
  0x44   : > { %311 = sfence }
  0x45   : > { %p339_p10 = scmp.lt.s32.totalorder %s1065_s9, 2  ;;  %p1273_p12 = scmp.ne.s32.totalorder %s1065_s9, 0 }
  0x46   : > { %v348_v0 = vld [vmem:[%s1255_s1] sm:$0xff] (!%p1273_p12)  ;;  %v349_v1 = vld [vmem:[%s1255_s1 + $0x8] sm:$0xff] (!%p1273_p12)  ;;  %v991_v2 = vmov (!%p1273_p12), 0.0|0.0   ;;  %vm992_vm0 = vmmov (!%p1273_p12), 0   ;;  %v993_v4 = vmov (!%p1273_p12), 0.0   ;;  %vm357_vm1 = vcmask (!%p1273_p12), 130048  }
  0x47   : > { %s340_s16 = scalar_select %p339_p10, %s1065_s9, 2 }
  0x48   : > { %346 = sbr.rel (%p1273_p12) target bundleno = 292 (0x124), region = 64  ;;  %787 = vmatprep.subr.bf16.mxu0 (!%p1273_p12), %v991_v2  ;;  %v788_v3 = vpack.c.bf16 (!%p1273_p12), %v349_v1, %v348_v0  ;;  %762 = vmatprep.mubr.msk.f32.mxu0 (!%p1273_p12), %vm992_vm0, %v993_v4  ;;  %v347_v5 = vld [vmem:[%s1254_s0] sm:$0xff] (!%p1273_p12)  ;;  %vm431_vm2 = vcmask (!%p1273_p12), 261120  }
  0x49   : > { %s732_s22 = sshll.u32 %s340_s16, 1  ;;  %v734_v6 = vld [vmem:[%s1256_s2] ss:$0 sm:$0xff] (!%p1273_p12) }
  0x4a   : > { %s1175_s18 = scalar_lea.vmem %s1258_s4, %s732_s22  ;;  %789 = vmatpush3.bf16.msra.mxu0 (!%p1273_p12), %v788_v3 }
  0x4d   : > { %763 = vmatmul.mubr.msk.f32.vlgmr.msra.gmra.mrb[0].mxu0 (!%p1273_p12), %vm357_vm1, %v347_v5 }
 0x120   : > { %v427_v7 = vpop.f32.mrb[0].mxu0 }
 0x121   : > { %v428_v8 = vadd.f32 %v734_v6, %v427_v7  ;;  %v764_v9 = vpop.f32.mrb[1].mxu0 }
 0x123   : > { %432 = vst.msk [vmem:[#allocation2] sm:$0xff] %vm431_vm2, %v428_v8 }
 0x124 PF: > { %v434_v10 = vld [vmem:[%s1160_s25] sm:$0xff]  ;;  %v435_v11 = vld [vmem:[%s1160_s25 + $0x8] sm:$0xff]  ;;  %v436_v12 = vld [vmem:[%s1160_s25 + $0x10] sm:$0xff]  ;;  %v994_v13 = vmov 0.0|0.0   ;;  %vm995_vm3 = vmmov 0   ;;  %v996_v16 = vmov 0.0   ;;  %v532_v37 = vlaneseq }
 0x125   : > { %790 = vmatprep.subr.bf16.mxu0 %v994_v13  ;;  %v791_v14 = vpack.c.bf16 %v435_v11, %v434_v10  ;;  %v437_v15 = vld [vmem:[%s1160_s25 + $0x18] sm:$0xff]  ;;  %773 = vmatprep.mubr.msk.f32.mxu0 %vm995_vm3, %v996_v16  ;;  %vm438_vm4 = vcmask 261120   ;;  %s545_s30 = sld [smem:[#allocation7 + %s1065_s9]]  ;;  %p737_p3 = scmp.ne.s32.totalorder %s1065_s9, 2 }
 0x126   : > { %v794_v17 = vpack.c.bf16 %v437_v15, %v436_v12  ;;  %v533_v40 = vshrl.u32 %v532_v37, 7  ;;  %v531_v43 = vld [vmem:[%s1175_s18] sm:$0x3]  ;;  %v556_v56 = vld [vmem:[%s1259_s5 + $0x8] sm:$0xff] (!%p737_p3)  ;;  %v557_v57 = vld [vmem:[%s1259_s5 + $0x10] sm:$0xff] (!%p737_p3)  ;;  %v997_v58 = vmov (!%p737_p3), 0.0|0.0  }
 0x127   : > { %792 = vmatpush3.bf16.msra.mxu0 %v791_v14  ;;  %v555_v55 = vld [vmem:[%s1259_s5] sm:$0xff] (!%p737_p3)  ;;  %v558_v60 = vld [vmem:[%s1259_s5 + $0x18] sm:$0xff] (!%p737_p3)  ;;  %vm998_vm5 = vmmov (!%p737_p3), 0   ;;  %v999_v61 = vmov (!%p737_p3), 0.0   ;;  %vm639_vm6 = vcmask (!%p737_p3), 195584  }
 0x128   : > { %793 = vmatprep.subr.bf16.mxu0 %v994_v13  ;;  %v534_v42 = vsub.s32 0, %v533_v40  ;;  %v542_v45 = vsub.s32 1, %v533_v40  ;;  %v797_v59 = vpack.c.bf16 (!%p737_p3), %v556_v56, %v555_v55  ;;  %v800_v62 = vpack.c.bf16 (!%p737_p3), %v558_v60, %v557_v57  ;;  %v738_v63 = vld [vmem:[%s1260_s6] ss:$0 sm:$0xff] (!%p737_p3) }
 0x12a   : > { %v433_v18 = vld [vmem:[#allocation2] sm:$0xff]  ;;  %v535_v44 = vrot.slane %v531_v43, %v534_v42  ;;  %v543_v47 = vrot.slane %v531_v43, %v542_v45 }
 0x12b   : > { %795 = vmatpush3.bf16.msra.mxu0 %v794_v17  ;;  %v547_v51 = vstv %s545_s30 }
 0x12c   : > { %796 = vmatprep.subr.bf16.mxu0 (!%p737_p3), %v997_v58 }
 0x12e   : > { %774 = vmatmul.mubr.msk.f32.vlgmr.msra.gmra.mrb[0].mxu0 %vm438_vm4, %v433_v18 }
 0x12f   : > { %784 = vmatprep.mubr.msk.f32.mxu0 (!%p737_p3), %vm998_vm5, %v999_v61  ;;  %798 = vmatpush3.bf16.msra.mxu0 (!%p737_p3), %v797_v59 }
 0x130   : > { %799 = vmatprep.subr.bf16.mxu0 (!%p737_p3), %v997_v58 }
 0x133   : > { %801 = vmatpush3.bf16.msra.mxu0 (!%p737_p3), %v800_v62 }
 0x201   : > { %v508_v19 = vpop.f32.mrb[0].mxu0 }
 0x202   : > { %v512_v20 = vsel %vm438_vm4, %v508_v19, 0.0  ;;  %v775_v21 = vpop.f32.mrb[1].mxu0 }
 0x203   : > { %v513_v22 = vrot.slane %v512_v20, 4 }
 0x205   : > { %v514_v23 = vadd.f32 %v513_v22, %v512_v20 }
 0x207   : > { %v515_v24 = vrot.slane %v514_v23, 2 }
 0x209   : > { %v516_v25 = vadd.f32 %v515_v24, %v514_v23 }
 0x20b   : > { %v517_v26 = vrot.slane %v516_v25, 1 }
 0x20d   : > { %v518_v27 = vadd.f32 %v517_v26, %v516_v25 }
 0x20f   : > { %v520_v28 = vmul.f32 0.125, %v518_v27 }
 0x211   : > { %v521_v29 = vsub.f32 %v508_v19, %v520_v28 }
 0x213   : > { %v522_v30 = vmul.f32 %v521_v29, %v521_v29  ;;  %v536_v46 = vmul.f32 %v535_v44, %v521_v29 }
 0x215   : > { %v523_v31 = vsel %vm438_vm4, %v522_v30, 0.0 }
 0x216   : > { %v524_v32 = vrot.slane %v523_v31, 4 }
 0x218   : > { %v525_v33 = vadd.f32 %v524_v32, %v523_v31 }
 0x21a   : > { %v526_v34 = vrot.slane %v525_v33, 2 }
 0x21c   : > { %v527_v35 = vadd.f32 %v526_v34, %v525_v33 }
 0x21e   : > { %v528_v36 = vrot.slane %v527_v35, 1 }
 0x220   : > { %v529_v38 = vadd.f32 %v528_v36, %v527_v35 }
 0x222   : > { %v530_v39 = vmul.f32 0.125, %v529_v38 }
 0x224   : > { %v537_v41 = vadd.f32 1e-05, %v530_v39 }
 0x226   : > { %870 = vrsqrt.f32 %v537_v41 }
 0x230   : > { %v871_v48 = vpop.eup %870 }
 0x231   : > { %v539_v49 = vmul.f32 %v871_v48, %v536_v46 }
 0x233   : > { %v544_v50 = vadd.f32 %v543_v47, %v539_v49 }
 0x235   : > { %v546_v52 = vmax.f32 %v544_v50, 0.0  ;;  %554 = sbr.rel (%p737_p3) target bundleno = 786 (0x312), region = 68 }
 0x237   : > { %v548_v53 = vmul.f32 %v547_v51, %v546_v52 }
 0x239   : > { %v549_v54 = vadd.f32 %v548_v53, %v433_v18 }
 0x23b   : > { %550 = vst.msk [vmem:[#allocation2] sm:$0xff] %vm438_vm4, %v549_v54  ;;  %785 = vmatmul.mubr.msk.f32.vlgmr.msra.gmra.mrb[0].mxu0 (!%p737_p3), %vm438_vm4, %v549_v54 }
 0x30e   : > { %v635_v0 = vpop.f32.mrb[0].mxu0 }
 0x30f   : > { %v636_v1 = vadd.f32 %v738_v63, %v635_v0  ;;  %v786_v2 = vpop.f32.mrb[1].mxu0 }
 0x311   : > { %640 = vst.msk [vmem:[#allocation8] sm:$0xff] %vm639_vm6, %v636_v1 }
 0x312 PF: > { %p823_p6 = scmp.eq.s32.totalorder %s1065_s9, 2  ;;  %s1000_s20 = smov [#allocation8]  }
 0x313   : > { %s648_s23 = sshll.u32 %s1000_s20, 4  ;;  %s649_s23 = int_to_ptr.vmem [resolvable:$true] %s648_s23 }
 0x314   : > { %s917_s27 = scalar_lea.vmem %s649_s23, 128  ;;  %p924_p9 = scmp.lt.s32.totalorder %s649_s23, %s649_s23 }
 0x315   : > { %p918_p7 = scmp.ne.s32.totalorder %s649_s23, %s917_s27  ;;  %p925_p13 = scmp.lt.s32.totalorder %s917_s27, %s917_s27 }
 0x317   : > { %p919_p11 = pnand %p918_p7, %p823_p6  ;;  %p926_p1 = por %p925_p13, %p924_p9 }
 0x319   : > { %p920_p4 = pneg %p919_p11 }
 0x31b   : > { %p927_p2 = pnand %p926_p1, %p920_p4 }
 0x31d   : > { %930 = shalt.err (!%p927_p2)
}
 0x31e   : > { %s931_s21 = scalar_lea.hbm %s1262_s8, 128 }
 0x31f   : > { %p932_p5 = scmp.ne.s32.totalorder %s1262_s8, %s931_s21  ;;  %p937_p10 = scmp.lt.u32.totalorder %s931_s21, %s1262_s8 }
 0x321   : > { %p933_p8 = pnand %p932_p5, %p823_p6 }
 0x323   : > { %p934_p0 = pneg %p933_p8 }
 0x325   : > { %p939_p12 = pnand %p937_p10, %p934_p0 }
 0x327   : > { %942 = shalt.err (!%p939_p12)
}
 0x328   : > { %809 = dma.vmem_to_hbm [thread:$0]  (%p823_p6), %s649_s23, 128, %s1262_s8, [#allocation5]  }
 0x329   : > { %968 = dma.done.wait (%p823_p6), [#allocation5], 128  }
 0x32a   : > { %970 = vsyncadd (%p823_p6), [#allocation5], 4294967168 }
 0x32b PF: > { %p20_p3 = scmp.ge.s32.totalorder %s1068_s10, 5   ;;  %s1274_s27 = smov %s977_s28 }
 0x32c   : > { %s1275_s28 = smov %s981_s29  ;;  %s1276_s29 = smov %s1078_s13 }
 0x32d   : > { %s1277_s30 = smov %s1068_s10  ;;  %22 = sbr.rel (!%p20_p3) target bundleno = 5 (0x5), region = 105 }
 0x334   :  { %661 = vsyncpa [#allocation4], 1 }
 0x335   :  { %663 = vsyncpa [#allocation4 + $0x1], 1 }
 0x336   :  { %664 = vsyncpa [#allocation5], 1 }
 0x337   :  { %666 = vsyncpa [#allocation5 + $0x1], 1 }
 0x338   :  { %667 = vsyncpa [#allocation6], 1 }
 0x339   :  { %669 = vsyncpa [#allocation6 + $0x1], 1 }

</bundles_post_ra>
